<compile_context>
chip_gen: v5e
topology: v5e:2x2
jax: 0.10.0
libtpu: 0.0.40
codegen_flags: <defaults>
</compile_context>

<pallas_src>
import math

import jax
import jax.numpy as jnp
from jax import lax
from jax.experimental import pallas as pl
from jax.experimental.pallas import tpu as pltpu


def _num_tensorcores():
    """Best-effort TensorCores-per-chip (2 on v7x, 1 on v5e/v6e)."""
    try:
        info = pltpu.get_tpu_info()
        for name in ("num_cores", "core_count", "num_tensorcores", "tensorcore_count"):
            val = getattr(info, name, None)
            if isinstance(val, int) and val > 0:
                return val
    except Exception:
        pass
    try:
        kind = jax.local_devices()[0].device_kind.lower()
        if "v7" in kind or "7x" in kind:
            return 2
    except Exception:
        pass
    return 1


def _physical_vmem_bytes():
    try:
        info = pltpu.get_tpu_info()
        val = getattr(info, "vmem_capacity_bytes", None)
        if isinstance(val, int) and val > 0:
            return val
    except Exception:
        pass
    return 64 << 20  # assume the smallest (v7x) if the query is unavailable


def _make_attention_kernel(batch_tile, nq, nk, num_heads, c_per_head):
    scale = 1.0 / math.sqrt(c_per_head)

    def kernel(q_ref, k_ref, v_ref,
               wq_ref, bq_ref, wk_ref, bk_ref, wv_ref, bv_ref,
               wo_ref, bo_ref, out_ref,
               qp_scr, kp_scr, vp_scr, oh_scr):
        dt = q_ref.dtype  # weights were cast to this dtype in the wrapper

        # ---- q/k/v projections: batch folded into M, one (rows,E)@(E,D) each.
        # Native-dtype MXU operands, f32 accumulation; results stay in VMEM
        # scratch in the activation dtype for the attention matmuls.
        qp_scr[...] = (jnp.dot(q_ref[...], wq_ref[...],
                               preferred_element_type=jnp.float32)
                       + bq_ref[...]).astype(dt)
        kp_scr[...] = (jnp.dot(k_ref[...], wk_ref[...],
                               preferred_element_type=jnp.float32)
                       + bk_ref[...]).astype(dt)
        vp_scr[...] = (jnp.dot(v_ref[...], wv_ref[...],
                               preferred_element_type=jnp.float32)
                       + bv_ref[...]).astype(dt)

        wo = wo_ref[...]                       # (D, E), activation dtype
        bo = bo_ref[...].astype(jnp.float32)   # (1, E)

        def per_batch(b, carry):
            qrow = pl.multiple_of(b * nq, nq)
            krow = pl.multiple_of(b * nk, nk)

            # One K transpose per batch element (XLU) instead of one implicit
            # transpose per (batch, head).
            k_bt = kp_scr[pl.ds(krow, nk), :].T            # (D, Nk)

            for h in range(num_heads):                     # small H: unrolled
                lo = h * c_per_head
                hi = lo + c_per_head
                q_h = qp_scr[pl.ds(qrow, nq), lo:hi]       # (Nq, c)
                v_h = vp_scr[pl.ds(krow, nk), lo:hi]       # (Nk, c)

                # scores = q_h @ k_h^T, plain (M,K)x(K,N), f32 accumulation
                s = jnp.dot(q_h, k_bt[lo:hi, :],
                            preferred_element_type=jnp.float32) * scale
                # numerically-stable softmax over keys (f32; EUP reciprocal)
                m = jnp.max(s, axis=-1, keepdims=True)
                p = jnp.exp(s - m)
                p = p * pl.reciprocal(jnp.sum(p, axis=-1, keepdims=True),
                                      approx=True)
                o_h = jnp.dot(p.astype(dt), v_h,
                              preferred_element_type=jnp.float32)   # (Nq, c)
                oh_scr[:, lo:hi] = o_h.astype(dt)          # recombine heads

            # Single fused output projection per batch element (one MXU push
            # instead of H per-head pushes + H f32 adds).
            out = (jnp.dot(oh_scr[...], wo, preferred_element_type=jnp.float32)
                   + bo)
            # out_ref is itself the step's VMEM block; row writes here are the
            # only stores, written back to HBM once per grid step.
            out_ref[pl.ds(qrow, nq), :] = out.astype(out_ref.dtype)
            return carry

        lax.fori_loop(0, batch_tile, per_batch, None)

    return kernel


def attention_forward(q, k, v, params, num_heads, *, batch_tile=None, num_cores=None):
    """q: (B, Nq, E), k/v: (B, Nk, E).  Returns (B, Nq, E)."""
    B, Nq, E = q.shape
    Bk, Nk, Ek = k.shape
    assert Bk == B and Ek == E and v.shape == k.shape
    act_dtype = q.dtype
    D = params["wq"].shape[1]                 # internal_dim
    assert D % num_heads == 0
    c_per_head = D // num_heads

    # Native-dtype MXU path: match parameter dtype to the activation dtype.
    pr = {n: jnp.asarray(w, act_dtype) for n, w in params.items()}

    itemsize = jnp.dtype(act_dtype).itemsize
    pack = max(8, 32 // itemsize)             # sublane pack: 8 f32 / 16 bf16 / 32 i8

    def rows_ok(bt):
        # (8,128) BlockSpec rule + dtype sublane packing on the row blocks.
        # (lane dim E equals the full array dim, so it is always legal.)
        if bt == B:
            return True
        return (bt * Nq) % pack == 0 and (bt * Nk) % pack == 0

    def step_vmem_bytes(bt):
        io = 2 * (bt * Nq * E + 2 * bt * Nk * E + bt * Nq * E) * itemsize   # dbl-buffered blocks
        wts = 2 * (3 * E * D + D * E + 3 * D + E) * itemsize                # weights + biases
        scr = (bt * Nq * D + 2 * bt * Nk * D + Nq * D) * itemsize           # projection scratch
        live = 4 * bt * max(Nq, Nk) * max(D, E) * 4                         # f32 temporaries headroom
        return io + wts + scr + live

    phys_vmem = _physical_vmem_bytes()
    budget = int(phys_vmem * 0.75)

    if batch_tile is None:
        batch_tile = B
        # Shrink until the per-step working set fits the VMEM budget.
        while (batch_tile > 1 and step_vmem_bytes(batch_tile) > budget
               and B % (batch_tile // 2) == 0 and rows_ok(batch_tile // 2)):
            batch_tile //= 2
        # Split across TensorCores only when the chip actually has >1 TC
        # (v7x); extra grid steps on single-TC v5e/v6e are pure overhead.
        cores = num_cores if num_cores is not None else _num_tensorcores()
        if cores > 1 and batch_tile == B and B % cores == 0:
            bt = B // cores
            if bt * min(Nq, Nk) >= 128 and rows_ok(bt):
                batch_tile = bt
    else:
        assert B % batch_tile == 0, "batch_tile must divide the batch"
        assert rows_ok(batch_tile), (
            "batch_tile violates the (8,128)/dtype sublane-pack rule on row blocks")
    num_steps = B // batch_tile

    vmem_limit = int(min(budget, max(2 * step_vmem_bytes(batch_tile), 32 << 20)))

    # Fold batch into the row dimension (contiguous reshape: free in HBM).
    q2 = q.reshape(B * Nq, E)
    k2 = k.reshape(B * Nk, E)
    v2 = v.reshape(B * Nk, E)

    kernel = _make_attention_kernel(batch_tile, Nq, Nk, num_heads, c_per_head)

    full = lambda shape: pl.BlockSpec(shape, lambda i: (0,) * len(shape))

    grid_spec = pltpu.PrefetchScalarGridSpec(
        num_scalar_prefetch=0,
        grid=(num_steps,),
        in_specs=[
            pl.BlockSpec((batch_tile * Nq, E), lambda i: (i, 0)),
            pl.BlockSpec((batch_tile * Nk, E), lambda i: (i, 0)),
            pl.BlockSpec((batch_tile * Nk, E), lambda i: (i, 0)),
            full((E, D)), full((1, D)),     # q_proj
            full((E, D)), full((1, D)),     # k_proj
            full((E, D)), full((1, D)),     # v_proj
            full((D, E)), full((1, E)),     # out_proj
        ],
        out_specs=pl.BlockSpec((batch_tile * Nq, E), lambda i: (i, 0)),
        scratch_shapes=[
            pltpu.VMEM((batch_tile * Nq, D), act_dtype),   # qp
            pltpu.VMEM((batch_tile * Nk, D), act_dtype),   # kp
            pltpu.VMEM((batch_tile * Nk, D), act_dtype),   # vp
            pltpu.VMEM((Nq, D), act_dtype),                # recombined heads
        ],
    )

    out = pl.pallas_call(
        kernel,
        grid_spec=grid_spec,
        out_shape=jax.ShapeDtypeStruct((B * Nq, E), act_dtype),
        compiler_params=pltpu.CompilerParams(
            dimension_semantics=("parallel",),
            vmem_limit_bytes=vmem_limit),
    )(q2, k2, v2,
      pr["wq"], pr["bq"], pr["wk"], pr["bk"], pr["wv"], pr["bv"],
      pr["wo"], pr["bo"])

    return out.reshape(B, Nq, E)


def init_params(key, embedding_dim, internal_dim):
    """Deterministic init mimicking nn.Linear default (uniform +/- 1/sqrt(fan_in)).
    Weights stored pre-transposed as (in_features, out_features)."""
    ks = jax.random.split(key, 8)

    def linear(kw, kb, fan_in, fan_out):
        bound = 1.0 / math.sqrt(fan_in)
        w = jax.random.uniform(kw, (fan_in, fan_out), jnp.float32, -bound, bound)
        b = jax.random.uniform(kb, (1, fan_out), jnp.float32, -bound, bound)
        return w, b

    wq, bq = linear(ks[0], ks[1], embedding_dim, internal_dim)
    wk, bk = linear(ks[2], ks[3], embedding_dim, internal_dim)
    wv, bv = linear(ks[4], ks[5], embedding_dim, internal_dim)
    wo, bo = linear(ks[6], ks[7], internal_dim, embedding_dim)
    return dict(wq=wq, bq=bq, wk=wk, bk=bk, wv=wv, bv=bv, wo=wo, bo=bo)


def reference_forward(q, k, v, params, num_heads):
    """Pure-JAX reference for correctness checking."""
    def lin(x, w, b):
        return x @ w + b
    D = params["wq"].shape[1]
    c = D // num_heads
    qp = lin(q, params["wq"], params["bq"])
    kp = lin(k, params["wk"], params["bk"])
    vp = lin(v, params["wv"], params["bv"])
    B, Nq, _ = qp.shape
    _, Nk, _ = kp.shape
    qh = qp.reshape(B, Nq, num_heads, c).transpose(0, 2, 1, 3)
    kh = kp.reshape(B, Nk, num_heads, c).transpose(0, 2, 1, 3)
    vh = vp.reshape(B, Nk, num_heads, c).transpose(0, 2, 1, 3)
    attn = jnp.einsum("bhqc,bhkc->bhqk", qh, kh) / math.sqrt(c)
    attn = jax.nn.softmax(attn, axis=-1)
    out = jnp.einsum("bhqk,bhkc->bhqc", attn, vh)
    out = out.transpose(0, 2, 1, 3).reshape(B, Nq, D)
    return lin(out, params["wo"], params["bo"])


if __name__ == "__main__":
    # Small shapes consistent with the module:
    #   embedding_dim=32, num_heads=4, downsample_rate=1 -> internal_dim=32
    B, Nq, Nk, E = 2, 8, 8, 32
    num_heads = 4
    downsample_rate = 1
    internal_dim = E // downsample_rate

    key = jax.random.PRNGKey(0)
    kq, kk, kv, kp = jax.random.split(key, 4)
    q = jax.random.normal(kq, (B, Nq, E), jnp.float32)
    k = jax.random.normal(kk, (B, Nk, E), jnp.float32)
    v = jax.random.normal(kv, (B, Nk, E), jnp.float32)

    params = init_params(kp, E, internal_dim)

    out = attention_forward(q, k, v, params, num_heads)
    out = jax.block_until_ready(out)

    ref = reference_forward(q, k, v, params, num_heads)
    assert out.shape == (B, Nq, E)
    # approx reciprocal in the softmax denominator => slightly looser tolerance
    assert jnp.allclose(out, ref, atol=2e-3, rtol=2e-3), "mismatch vs reference"

    print("KERNEL_OK")
</pallas_src>

<mosaic_0001>
module attributes {stable_mosaic.version = 11 : i64} {
  func.func @kernel(%arg0: i32, %arg1: memref<16x32xf32, #tpu.memory_space<vmem>>, %arg2: memref<16x32xf32, #tpu.memory_space<vmem>>, %arg3: memref<16x32xf32, #tpu.memory_space<vmem>>, %arg4: memref<32x32xf32, #tpu.memory_space<vmem>>, %arg5: memref<1x32xf32, #tpu.memory_space<vmem>>, %arg6: memref<32x32xf32, #tpu.memory_space<vmem>>, %arg7: memref<1x32xf32, #tpu.memory_space<vmem>>, %arg8: memref<32x32xf32, #tpu.memory_space<vmem>>, %arg9: memref<1x32xf32, #tpu.memory_space<vmem>>, %arg10: memref<32x32xf32, #tpu.memory_space<vmem>>, %arg11: memref<1x32xf32, #tpu.memory_space<vmem>>, %arg12: memref<16x32xf32, #tpu.memory_space<vmem>>, %arg13: memref<16x32xf32, #tpu.memory_space<vmem>>, %arg14: memref<16x32xf32, #tpu.memory_space<vmem>>, %arg15: memref<16x32xf32, #tpu.memory_space<vmem>>, %arg16: memref<8x32xf32, #tpu.memory_space<vmem>>) attributes {dimension_semantics = [#tpu.dimension_semantics<parallel>], iteration_bounds = array<i64: 1>, scalar_prefetch = 0 : i64, scratch_operands = 4 : i64, tpu.core_type = #tpu.core_type<tc>, window_params = [{transform_indices = @transform_0, window_bounds = array<i64: 16, 32>}, {transform_indices = @transform_1, window_bounds = array<i64: 16, 32>}, {transform_indices = @transform_2, window_bounds = array<i64: 16, 32>}, {pipeline_mode = #tpu.pipeline_mode<synchronous>, transform_indices = @transform_3, window_bounds = array<i64: 32, 32>}, {pipeline_mode = #tpu.pipeline_mode<synchronous>, transform_indices = @transform_4, window_bounds = array<i64: 1, 32>}, {pipeline_mode = #tpu.pipeline_mode<synchronous>, transform_indices = @transform_5, window_bounds = array<i64: 32, 32>}, {pipeline_mode = #tpu.pipeline_mode<synchronous>, transform_indices = @transform_6, window_bounds = array<i64: 1, 32>}, {pipeline_mode = #tpu.pipeline_mode<synchronous>, transform_indices = @transform_7, window_bounds = array<i64: 32, 32>}, {pipeline_mode = #tpu.pipeline_mode<synchronous>, transform_indices = @transform_8, window_bounds = array<i64: 1, 32>}, {pipeline_mode = #tpu.pipeline_mode<synchronous>, transform_indices = @transform_9, window_bounds = array<i64: 32, 32>}, {pipeline_mode = #tpu.pipeline_mode<synchronous>, transform_indices = @transform_10, window_bounds = array<i64: 1, 32>}, {transform_indices = @transform_11, window_bounds = array<i64: 16, 32>}]} {
    %c0 = arith.constant 0 : index
    %c0_0 = arith.constant 0 : index
    %0 = vector.load %arg1[%c0, %c0_0] : memref<16x32xf32, #tpu.memory_space<vmem>>, vector<16x32xf32>
    %c0_1 = arith.constant 0 : index
    %c0_2 = arith.constant 0 : index
    %1 = vector.load %arg4[%c0_1, %c0_2] : memref<32x32xf32, #tpu.memory_space<vmem>>, vector<32x32xf32>
    %cst = arith.constant dense<0.000000e+00> : vector<16x32xf32>
    %2 = tpu.matmul %0, %1, %cst {dimension_numbers = #tpu.dot_dimension_numbers<[1], [0], [0], [1], [0, 0, 1, 1], [], []>} : vector<16x32xf32>, vector<32x32xf32>, vector<16x32xf32> -> vector<16x32xf32>
    %c0_3 = arith.constant 0 : index
    %c0_4 = arith.constant 0 : index
    %3 = vector.load %arg5[%c0_3, %c0_4] : memref<1x32xf32, #tpu.memory_space<vmem>>, vector<1x32xf32>
    %4 = vector.broadcast %3 : vector<1x32xf32> to vector<16x32xf32>
    %5 = arith.addf %2, %4 : vector<16x32xf32>
    %c0_5 = arith.constant 0 : index
    %c0_6 = arith.constant 0 : index
    %6 = vector.load %arg13[%c0_5, %c0_6] : memref<16x32xf32, #tpu.memory_space<vmem>>, vector<16x32xf32>
    tpu.vector_store %arg13[%c0_5, %c0_6], %5 {strides = array<i32>} : memref<16x32xf32, #tpu.memory_space<vmem>>, vector<16x32xf32>,
    %c0_7 = arith.constant 0 : index
    %c0_8 = arith.constant 0 : index
    %7 = vector.load %arg2[%c0_7, %c0_8] : memref<16x32xf32, #tpu.memory_space<vmem>>, vector<16x32xf32>
    %c0_9 = arith.constant 0 : index
    %c0_10 = arith.constant 0 : index
    %8 = vector.load %arg6[%c0_9, %c0_10] : memref<32x32xf32, #tpu.memory_space<vmem>>, vector<32x32xf32>
    %cst_11 = arith.constant dense<0.000000e+00> : vector<16x32xf32>
    %9 = tpu.matmul %7, %8, %cst_11 {dimension_numbers = #tpu.dot_dimension_numbers<[1], [0], [0], [1], [0, 0, 1, 1], [], []>} : vector<16x32xf32>, vector<32x32xf32>, vector<16x32xf32> -> vector<16x32xf32>
    %c0_12 = arith.constant 0 : index
    %c0_13 = arith.constant 0 : index
    %10 = vector.load %arg7[%c0_12, %c0_13] : memref<1x32xf32, #tpu.memory_space<vmem>>, vector<1x32xf32>
    %11 = vector.broadcast %10 : vector<1x32xf32> to vector<16x32xf32>
    %12 = arith.addf %9, %11 : vector<16x32xf32>
    %c0_14 = arith.constant 0 : index
    %c0_15 = arith.constant 0 : index
    %13 = vector.load %arg14[%c0_14, %c0_15] : memref<16x32xf32, #tpu.memory_space<vmem>>, vector<16x32xf32>
    tpu.vector_store %arg14[%c0_14, %c0_15], %12 {strides = array<i32>} : memref<16x32xf32, #tpu.memory_space<vmem>>, vector<16x32xf32>,
    %c0_16 = arith.constant 0 : index
    %c0_17 = arith.constant 0 : index
    %14 = vector.load %arg3[%c0_16, %c0_17] : memref<16x32xf32, #tpu.memory_space<vmem>>, vector<16x32xf32>
    %c0_18 = arith.constant 0 : index
    %c0_19 = arith.constant 0 : index
    %15 = vector.load %arg8[%c0_18, %c0_19] : memref<32x32xf32, #tpu.memory_space<vmem>>, vector<32x32xf32>
    %cst_20 = arith.constant dense<0.000000e+00> : vector<16x32xf32>
    %16 = tpu.matmul %14, %15, %cst_20 {dimension_numbers = #tpu.dot_dimension_numbers<[1], [0], [0], [1], [0, 0, 1, 1], [], []>} : vector<16x32xf32>, vector<32x32xf32>, vector<16x32xf32> -> vector<16x32xf32>
    %c0_21 = arith.constant 0 : index
    %c0_22 = arith.constant 0 : index
    %17 = vector.load %arg9[%c0_21, %c0_22] : memref<1x32xf32, #tpu.memory_space<vmem>>, vector<1x32xf32>
    %18 = vector.broadcast %17 : vector<1x32xf32> to vector<16x32xf32>
    %19 = arith.addf %16, %18 : vector<16x32xf32>
    %c0_23 = arith.constant 0 : index
    %c0_24 = arith.constant 0 : index
    %20 = vector.load %arg15[%c0_23, %c0_24] : memref<16x32xf32, #tpu.memory_space<vmem>>, vector<16x32xf32>
    tpu.vector_store %arg15[%c0_23, %c0_24], %19 {strides = array<i32>} : memref<16x32xf32, #tpu.memory_space<vmem>>, vector<16x32xf32>,
    %c0_25 = arith.constant 0 : index
    %c0_26 = arith.constant 0 : index
    %21 = vector.load %arg10[%c0_25, %c0_26] : memref<32x32xf32, #tpu.memory_space<vmem>>, vector<32x32xf32>
    %c0_27 = arith.constant 0 : index
    %c0_28 = arith.constant 0 : index
    %22 = vector.load %arg11[%c0_27, %c0_28] : memref<1x32xf32, #tpu.memory_space<vmem>>, vector<1x32xf32>
    %c0_i32 = arith.constant 0 : i32
    %c2_i32 = arith.constant 2 : i32
    %23 = arith.addi %c0_i32, %c2_i32 : i32
    %c1_i32 = arith.constant 1 : i32
    scf.for %arg17 = %c0_i32 to %23 step %c1_i32  : i32 {
      %c8_i32 = arith.constant 8 : i32
      %24 = arith.muli %arg17, %c8_i32 : i32
      %25 = tpu.assume_multiple %24, 8 : i32
      %c8_i32_30 = arith.constant 8 : i32
      %26 = arith.muli %arg17, %c8_i32_30 : i32
      %27 = tpu.assume_multiple %26, 8 : i32
      %28 = arith.index_cast %27 : i32 to index
      %c0_31 = arith.constant 0 : index
      %29 = vector.load %arg14[%28, %c0_31] : memref<16x32xf32, #tpu.memory_space<vmem>>, vector<8x32xf32>
      %30 = tpu.transpose %29, [1, 0] : vector<8x32xf32> -> vector<32x8xf32>
      %31 = arith.index_cast %25 : i32 to index
      %c0_32 = arith.constant 0 : index
      %32 = vector.load %arg13[%31, %c0_32] : memref<16x32xf32, #tpu.memory_space<vmem>>, vector<8x8xf32>
      %33 = arith.index_cast %27 : i32 to index
      %c0_33 = arith.constant 0 : index
      %34 = vector.load %arg15[%33, %c0_33] : memref<16x32xf32, #tpu.memory_space<vmem>>, vector<8x8xf32>
      %35 = vector.extract_strided_slice %30 {offsets = [0, 0], sizes = [8, 8], strides = [1, 1]} : vector<32x8xf32> to vector<8x8xf32>
      %cst_34 = arith.constant dense<0.000000e+00> : vector<8x8xf32>
      %36 = tpu.matmul %32, %35, %cst_34 {dimension_numbers = #tpu.dot_dimension_numbers<[1], [0], [0], [1], [0, 0, 1, 1], [], []>} : vector<8x8xf32>, vector<8x8xf32>, vector<8x8xf32> -> vector<8x8xf32>
      %cst_35 = arith.constant 0.353553385 : f32
      %37 = vector.broadcast %cst_35 : f32 to vector<8x8xf32>
      %38 = arith.mulf %36, %37 : vector<8x8xf32>
      %cst_36 = arith.constant dense<0xFF800000> : vector<8xf32>
      %39 = vector.multi_reduction <maximumf>, %38, %cst_36 [1] : vector<8x8xf32> to vector<8xf32>
      %40 = vector.shape_cast %39 : vector<8xf32> to vector<8x1xf32>
      %41 = vector.broadcast %40 : vector<8x1xf32> to vector<8x8xf32>
      %42 = arith.subf %38, %41 : vector<8x8xf32>
      %43 = math.exp %42 : vector<8x8xf32>
      %cst_37 = arith.constant dense<0.000000e+00> : vector<8xf32>
      %44 = vector.multi_reduction <add>, %43, %cst_37 [1] : vector<8x8xf32> to vector<8xf32>
      %45 = vector.shape_cast %44 : vector<8xf32> to vector<8x1xf32>
      %46 = tpu.reciprocal %45 {approx = true} : vector<8x1xf32> -> vector<8x1xf32>
      %47 = vector.broadcast %46 : vector<8x1xf32> to vector<8x8xf32>
      %48 = arith.mulf %43, %47 : vector<8x8xf32>
      %cst_38 = arith.constant dense<0.000000e+00> : vector<8x8xf32>
      %49 = tpu.matmul %48, %34, %cst_38 {dimension_numbers = #tpu.dot_dimension_numbers<[1], [0], [0], [1], [0, 0, 1, 1], [], []>} : vector<8x8xf32>, vector<8x8xf32>, vector<8x8xf32> -> vector<8x8xf32>
      %c0_39 = arith.constant 0 : index
      %c0_40 = arith.constant 0 : index
      %50 = vector.load %arg16[%c0_39, %c0_40] : memref<8x32xf32, #tpu.memory_space<vmem>>, vector<8x8xf32>
      tpu.vector_store %arg16[%c0_39, %c0_40], %49 {strides = array<i32>} : memref<8x32xf32, #tpu.memory_space<vmem>>, vector<8x8xf32>,
      %51 = arith.index_cast %25 : i32 to index
      %c8 = arith.constant 8 : index
      %52 = vector.load %arg13[%51, %c8] : memref<16x32xf32, #tpu.memory_space<vmem>>, vector<8x8xf32>
      %53 = arith.index_cast %27 : i32 to index
      %c8_41 = arith.constant 8 : index
      %54 = vector.load %arg15[%53, %c8_41] : memref<16x32xf32, #tpu.memory_space<vmem>>, vector<8x8xf32>
      %55 = vector.extract_strided_slice %30 {offsets = [8, 0], sizes = [8, 8], strides = [1, 1]} : vector<32x8xf32> to vector<8x8xf32>
      %cst_42 = arith.constant dense<0.000000e+00> : vector<8x8xf32>
      %56 = tpu.matmul %52, %55, %cst_42 {dimension_numbers = #tpu.dot_dimension_numbers<[1], [0], [0], [1], [0, 0, 1, 1], [], []>} : vector<8x8xf32>, vector<8x8xf32>, vector<8x8xf32> -> vector<8x8xf32>
      %cst_43 = arith.constant 0.353553385 : f32
      %57 = vector.broadcast %cst_43 : f32 to vector<8x8xf32>
      %58 = arith.mulf %56, %57 : vector<8x8xf32>
      %cst_44 = arith.constant dense<0xFF800000> : vector<8xf32>
      %59 = vector.multi_reduction <maximumf>, %58, %cst_44 [1] : vector<8x8xf32> to vector<8xf32>
      %60 = vector.shape_cast %59 : vector<8xf32> to vector<8x1xf32>
      %61 = vector.broadcast %60 : vector<8x1xf32> to vector<8x8xf32>
      %62 = arith.subf %58, %61 : vector<8x8xf32>
      %63 = math.exp %62 : vector<8x8xf32>
      %cst_45 = arith.constant dense<0.000000e+00> : vector<8xf32>
      %64 = vector.multi_reduction <add>, %63, %cst_45 [1] : vector<8x8xf32> to vector<8xf32>
      %65 = vector.shape_cast %64 : vector<8xf32> to vector<8x1xf32>
      %66 = tpu.reciprocal %65 {approx = true} : vector<8x1xf32> -> vector<8x1xf32>
      %67 = vector.broadcast %66 : vector<8x1xf32> to vector<8x8xf32>
      %68 = arith.mulf %63, %67 : vector<8x8xf32>
      %cst_46 = arith.constant dense<0.000000e+00> : vector<8x8xf32>
      %69 = tpu.matmul %68, %54, %cst_46 {dimension_numbers = #tpu.dot_dimension_numbers<[1], [0], [0], [1], [0, 0, 1, 1], [], []>} : vector<8x8xf32>, vector<8x8xf32>, vector<8x8xf32> -> vector<8x8xf32>
      %c0_47 = arith.constant 0 : index
      %c8_48 = arith.constant 8 : index
      %70 = vector.load %arg16[%c0_47, %c8_48] : memref<8x32xf32, #tpu.memory_space<vmem>>, vector<8x8xf32>
      tpu.vector_store %arg16[%c0_47, %c8_48], %69 {strides = array<i32>} : memref<8x32xf32, #tpu.memory_space<vmem>>, vector<8x8xf32>,
      %71 = arith.index_cast %25 : i32 to index
      %c16 = arith.constant 16 : index
      %72 = vector.load %arg13[%71, %c16] : memref<16x32xf32, #tpu.memory_space<vmem>>, vector<8x8xf32>
      %73 = arith.index_cast %27 : i32 to index
      %c16_49 = arith.constant 16 : index
      %74 = vector.load %arg15[%73, %c16_49] : memref<16x32xf32, #tpu.memory_space<vmem>>, vector<8x8xf32>
      %75 = vector.extract_strided_slice %30 {offsets = [16, 0], sizes = [8, 8], strides = [1, 1]} : vector<32x8xf32> to vector<8x8xf32>
      %cst_50 = arith.constant dense<0.000000e+00> : vector<8x8xf32>
      %76 = tpu.matmul %72, %75, %cst_50 {dimension_numbers = #tpu.dot_dimension_numbers<[1], [0], [0], [1], [0, 0, 1, 1], [], []>} : vector<8x8xf32>, vector<8x8xf32>, vector<8x8xf32> -> vector<8x8xf32>
      %cst_51 = arith.constant 0.353553385 : f32
      %77 = vector.broadcast %cst_51 : f32 to vector<8x8xf32>
      %78 = arith.mulf %76, %77 : vector<8x8xf32>
      %cst_52 = arith.constant dense<0xFF800000> : vector<8xf32>
      %79 = vector.multi_reduction <maximumf>, %78, %cst_52 [1] : vector<8x8xf32> to vector<8xf32>
      %80 = vector.shape_cast %79 : vector<8xf32> to vector<8x1xf32>
      %81 = vector.broadcast %80 : vector<8x1xf32> to vector<8x8xf32>
      %82 = arith.subf %78, %81 : vector<8x8xf32>
      %83 = math.exp %82 : vector<8x8xf32>
      %cst_53 = arith.constant dense<0.000000e+00> : vector<8xf32>
      %84 = vector.multi_reduction <add>, %83, %cst_53 [1] : vector<8x8xf32> to vector<8xf32>
      %85 = vector.shape_cast %84 : vector<8xf32> to vector<8x1xf32>
      %86 = tpu.reciprocal %85 {approx = true} : vector<8x1xf32> -> vector<8x1xf32>
      %87 = vector.broadcast %86 : vector<8x1xf32> to vector<8x8xf32>
      %88 = arith.mulf %83, %87 : vector<8x8xf32>
      %cst_54 = arith.constant dense<0.000000e+00> : vector<8x8xf32>
      %89 = tpu.matmul %88, %74, %cst_54 {dimension_numbers = #tpu.dot_dimension_numbers<[1], [0], [0], [1], [0, 0, 1, 1], [], []>} : vector<8x8xf32>, vector<8x8xf32>, vector<8x8xf32> -> vector<8x8xf32>
      %c0_55 = arith.constant 0 : index
      %c16_56 = arith.constant 16 : index
      %90 = vector.load %arg16[%c0_55, %c16_56] : memref<8x32xf32, #tpu.memory_space<vmem>>, vector<8x8xf32>
      tpu.vector_store %arg16[%c0_55, %c16_56], %89 {strides = array<i32>} : memref<8x32xf32, #tpu.memory_space<vmem>>, vector<8x8xf32>,
      %91 = arith.index_cast %25 : i32 to index
      %c24 = arith.constant 24 : index
      %92 = vector.load %arg13[%91, %c24] : memref<16x32xf32, #tpu.memory_space<vmem>>, vector<8x8xf32>
      %93 = arith.index_cast %27 : i32 to index
      %c24_57 = arith.constant 24 : index
      %94 = vector.load %arg15[%93, %c24_57] : memref<16x32xf32, #tpu.memory_space<vmem>>, vector<8x8xf32>
      %95 = vector.extract_strided_slice %30 {offsets = [24, 0], sizes = [8, 8], strides = [1, 1]} : vector<32x8xf32> to vector<8x8xf32>
      %cst_58 = arith.constant dense<0.000000e+00> : vector<8x8xf32>
      %96 = tpu.matmul %92, %95, %cst_58 {dimension_numbers = #tpu.dot_dimension_numbers<[1], [0], [0], [1], [0, 0, 1, 1], [], []>} : vector<8x8xf32>, vector<8x8xf32>, vector<8x8xf32> -> vector<8x8xf32>
      %cst_59 = arith.constant 0.353553385 : f32
      %97 = vector.broadcast %cst_59 : f32 to vector<8x8xf32>
      %98 = arith.mulf %96, %97 : vector<8x8xf32>
      %cst_60 = arith.constant dense<0xFF800000> : vector<8xf32>
      %99 = vector.multi_reduction <maximumf>, %98, %cst_60 [1] : vector<8x8xf32> to vector<8xf32>
      %100 = vector.shape_cast %99 : vector<8xf32> to vector<8x1xf32>
      %101 = vector.broadcast %100 : vector<8x1xf32> to vector<8x8xf32>
      %102 = arith.subf %98, %101 : vector<8x8xf32>
      %103 = math.exp %102 : vector<8x8xf32>
      %cst_61 = arith.constant dense<0.000000e+00> : vector<8xf32>
      %104 = vector.multi_reduction <add>, %103, %cst_61 [1] : vector<8x8xf32> to vector<8xf32>
      %105 = vector.shape_cast %104 : vector<8xf32> to vector<8x1xf32>
      %106 = tpu.reciprocal %105 {approx = true} : vector<8x1xf32> -> vector<8x1xf32>
      %107 = vector.broadcast %106 : vector<8x1xf32> to vector<8x8xf32>
      %108 = arith.mulf %103, %107 : vector<8x8xf32>
      %cst_62 = arith.constant dense<0.000000e+00> : vector<8x8xf32>
      %109 = tpu.matmul %108, %94, %cst_62 {dimension_numbers = #tpu.dot_dimension_numbers<[1], [0], [0], [1], [0, 0, 1, 1], [], []>} : vector<8x8xf32>, vector<8x8xf32>, vector<8x8xf32> -> vector<8x8xf32>
      %c0_63 = arith.constant 0 : index
      %c24_64 = arith.constant 24 : index
      %110 = vector.load %arg16[%c0_63, %c24_64] : memref<8x32xf32, #tpu.memory_space<vmem>>, vector<8x8xf32>
      tpu.vector_store %arg16[%c0_63, %c24_64], %109 {strides = array<i32>} : memref<8x32xf32, #tpu.memory_space<vmem>>, vector<8x8xf32>,
      %c0_65 = arith.constant 0 : index
      %c0_66 = arith.constant 0 : index
      %111 = vector.load %arg16[%c0_65, %c0_66] : memref<8x32xf32, #tpu.memory_space<vmem>>, vector<8x32xf32>
      %cst_67 = arith.constant dense<0.000000e+00> : vector<8x32xf32>
      %112 = tpu.matmul %111, %21, %cst_67 {dimension_numbers = #tpu.dot_dimension_numbers<[1], [0], [0], [1], [0, 0, 1, 1], [], []>} : vector<8x32xf32>, vector<32x32xf32>, vector<8x32xf32> -> vector<8x32xf32>
      %113 = vector.broadcast %22 : vector<1x32xf32> to vector<8x32xf32>
      %114 = arith.addf %112, %113 : vector<8x32xf32>
      %115 = arith.index_cast %25 : i32 to index
      %c0_68 = arith.constant 0 : index
      %116 = vector.load %arg12[%115, %c0_68] : memref<16x32xf32, #tpu.memory_space<vmem>>, vector<8x32xf32>
      tpu.vector_store %arg12[%115, %c0_68], %114 {strides = array<i32>} : memref<16x32xf32, #tpu.memory_space<vmem>>, vector<8x32xf32>,
    }
    %c2_i32_29 = arith.constant 2 : i32
    return
  }
  func.func @transform_0(%arg0: i32) -> (i32, i32) {
    %c0_i32 = arith.constant 0 : i32
    %c0_i32_0 = arith.constant 0 : i32
    return %arg0, %c0_i32 : i32, i32
  }
  func.func @transform_1(%arg0: i32) -> (i32, i32) {
    %c0_i32 = arith.constant 0 : i32
    %c0_i32_0 = arith.constant 0 : i32
    return %arg0, %c0_i32 : i32, i32
  }
  func.func @transform_2(%arg0: i32) -> (i32, i32) {
    %c0_i32 = arith.constant 0 : i32
    %c0_i32_0 = arith.constant 0 : i32
    return %arg0, %c0_i32 : i32, i32
  }
  func.func @transform_3(%arg0: i32) -> (i32, i32) {
    %c0_i32 = arith.constant 0 : i32
    %c0_i32_0 = arith.constant 0 : i32
    %c0_i32_1 = arith.constant 0 : i32
    return %c0_i32, %c0_i32_0 : i32, i32
  }
  func.func @transform_4(%arg0: i32) -> (i32, i32) {
    %c0_i32 = arith.constant 0 : i32
    %c0_i32_0 = arith.constant 0 : i32
    %c0_i32_1 = arith.constant 0 : i32
    return %c0_i32, %c0_i32_0 : i32, i32
  }
  func.func @transform_5(%arg0: i32) -> (i32, i32) {
    %c0_i32 = arith.constant 0 : i32
    %c0_i32_0 = arith.constant 0 : i32
    %c0_i32_1 = arith.constant 0 : i32
    return %c0_i32, %c0_i32_0 : i32, i32
  }
  func.func @transform_6(%arg0: i32) -> (i32, i32) {
    %c0_i32 = arith.constant 0 : i32
    %c0_i32_0 = arith.constant 0 : i32
    %c0_i32_1 = arith.constant 0 : i32
    return %c0_i32, %c0_i32_0 : i32, i32
  }
  func.func @transform_7(%arg0: i32) -> (i32, i32) {
    %c0_i32 = arith.constant 0 : i32
    %c0_i32_0 = arith.constant 0 : i32
    %c0_i32_1 = arith.constant 0 : i32
    return %c0_i32, %c0_i32_0 : i32, i32
  }
  func.func @transform_8(%arg0: i32) -> (i32, i32) {
    %c0_i32 = arith.constant 0 : i32
    %c0_i32_0 = arith.constant 0 : i32
    %c0_i32_1 = arith.constant 0 : i32
    return %c0_i32, %c0_i32_0 : i32, i32
  }
  func.func @transform_9(%arg0: i32) -> (i32, i32) {
    %c0_i32 = arith.constant 0 : i32
    %c0_i32_0 = arith.constant 0 : i32
    %c0_i32_1 = arith.constant 0 : i32
    return %c0_i32, %c0_i32_0 : i32, i32
  }
  func.func @transform_10(%arg0: i32) -> (i32, i32) {
    %c0_i32 = arith.constant 0 : i32
    %c0_i32_0 = arith.constant 0 : i32
    %c0_i32_1 = arith.constant 0 : i32
    return %c0_i32, %c0_i32_0 : i32, i32
  }
  func.func @transform_11(%arg0: i32) -> (i32, i32) {
    %c0_i32 = arith.constant 0 : i32
    %c0_i32_0 = arith.constant 0 : i32
    return %arg0, %c0_i32 : i32, i32
  }
}

</mosaic_0001>

<bundles_post_ra>
// kernel: tpu_custom_call.1
= control target key start
LH: loop header
LB: loop body
LE: loop exit
PB: predicated region body
PF: predicated region fallthrough
CT: control target
= control target key end

     0   :  { %16 = vsyncpa [#allocation7], 0  ;;  %s1132_s0 = inlined_call_operand.hbm [shape: f32[16,32], index: 0, kind: input, shape index: {}]   ;;  %s1133_s1 = inlined_call_operand.hbm [shape: f32[16,32], index: 1, kind: input, shape index: {}]   ;;  %s1134_s2 = inlined_call_operand.hbm [shape: f32[16,32], index: 2, kind: input, shape index: {}]   ;;  %s1135_s3 = inlined_call_operand.hbm [shape: f32[32,32], index: 3, kind: input, shape index: {}]   ;;  %s1136_s4 = inlined_call_operand.vmem [shape: f32[1,32], index: 4, kind: input, shape index: {}]   ;;  %s1137_s5 = inlined_call_operand.hbm [shape: f32[32,32], index: 5, kind: input, shape index: {}]   ;;  %s1138_s6 = inlined_call_operand.vmem [shape: f32[1,32], index: 6, kind: input, shape index: {}]   ;;  %s1139_s7 = inlined_call_operand.hbm [shape: f32[32,32], index: 7, kind: input, shape index: {}]   ;;  %s1140_s8 = inlined_call_operand.vmem [shape: f32[1,32], index: 8, kind: input, shape index: {}]   ;;  %s1141_s9 = inlined_call_operand.hbm [shape: f32[32,32], index: 9, kind: input, shape index: {}]   ;;  %s1142_s10 = inlined_call_operand.vmem [shape: f32[1,32], index: 10, kind: input, shape index: {}]   ;;  %s1143_s11 = inlined_call_operand.hbm [shape: f32[16,32], index: 11, kind: output, shape index: {}]  }
   0x1   :  { %17 = vsyncpa [#allocation10], 0 }
   0x2   :  { %18 = vsyncpa [#allocation13], 0 }
   0x3   :  { %19 = vsyncpa [#allocation16], 0 }
   0x4   :  { %20 = vsyncpa [#allocation8], 0  ;;  %s38_s19 = sshll.u32 %s1133_s1, 4  ;;  %s922_s20 = smov [#allocation9]   ;;  %s39_s19 = int_to_ptr.hbm [resolvable:$true] %s38_s19 }
   0x5   :  { %s40_s21 = sshll.u32 %s922_s20, 4  ;;  %s64_s24 = sshll.u32 %s1135_s3, 4  ;;  %s41_s21 = int_to_ptr.vmem [resolvable:$true] %s40_s21  ;;  %s65_s24 = int_to_ptr.hbm [resolvable:$true] %s64_s24 }
   0x6   :  { %s923_s25 = smov 128   ;;  %s924_s26 = smov 8  }
   0x7   :  { %46 = dma.hbm_to_vmem [thread:$0]  %s39_s19, 256, %s41_s21, [#allocation10], %s923_s25, %s923_s25, %s924_s26  }
   0x8   :  { %s925_s27 = smov [#allocation12]   ;;  %s94_s1 = sshll.u32 %s1139_s7, 4  ;;  %s95_s1 = int_to_ptr.hbm [resolvable:$true] %s94_s1 }
   0x9   :  { %s66_s28 = sshll.u32 %s925_s27, 4  ;;  %s25_s13 = sshll.u32 %s1132_s0, 4  ;;  %s67_s28 = int_to_ptr.vmem [resolvable:$true] %s66_s28  ;;  %s26_s13 = int_to_ptr.hbm [resolvable:$true] %s25_s13 }
   0xa   :  { %72 = dma.hbm_to_vmem [thread:$0]  %s65_s24, 512, %s67_s28, [#allocation13], %s923_s25, %s923_s25, %s924_s26  }
   0xb   :  { %s926_s14 = smov [#allocation15]   ;;  %s927_s16 = smov [#allocation6]  }
   0xc   :  { %s96_s15 = sshll.u32 %s926_s14, 4  ;;  %s27_s7 = sshll.u32 %s927_s16, 4  ;;  %s97_s15 = int_to_ptr.vmem [resolvable:$true] %s96_s15  ;;  %s28_s7 = int_to_ptr.vmem [resolvable:$true] %s27_s7 }
   0xd   :  { %102 = dma.hbm_to_vmem [thread:$0]  %s95_s1, 512, %s97_s15, [#allocation16], %s923_s25, %s923_s25, %s924_s26  }
   0xe   :  { %s51_s19 = sshll.u32 %s1134_s2, 4  ;;  %s79_s21 = sshll.u32 %s1137_s5, 4  ;;  %s52_s19 = int_to_ptr.hbm [resolvable:$true] %s51_s19  ;;  %s80_s21 = int_to_ptr.hbm [resolvable:$true] %s79_s21 }
   0xf   :  { %33 = dma.hbm_to_vmem [thread:$0]  %s26_s13, 256, %s28_s7, [#allocation7], %s923_s25, %s923_s25, %s924_s26  }
  0x10   :  { %s928_s22 = smov [#allocation11]   ;;  %s929_s24 = smov [#allocation14]  }
  0x11   :  { %s53_s23 = sshll.u32 %s928_s22, 4  ;;  %s81_s2 = sshll.u32 %s929_s24, 4  ;;  %s54_s23 = int_to_ptr.vmem [resolvable:$true] %s53_s23  ;;  %s82_s2 = int_to_ptr.vmem [resolvable:$true] %s81_s2 }
  0x12   :  { %59 = dma.hbm_to_vmem [thread:$0]  %s52_s19, 256, %s54_s23, [#allocation10], %s923_s25, %s923_s25, %s924_s26  }
  0x13   :  { %s109_s29 = sshll.u32 %s1141_s9, 4  ;;  %s930_s5 = smov [#allocation17]   ;;  %s110_s29 = int_to_ptr.hbm [resolvable:$true] %s109_s29 }
  0x14   :  { %87 = dma.hbm_to_vmem [thread:$0]  %s80_s21, 512, %s82_s2, [#allocation13], %s923_s25, %s923_s25, %s924_s26  }
  0x15   :  { %s111_s30 = sshll.u32 %s930_s5, 4  ;;  %s112_s30 = int_to_ptr.vmem [resolvable:$true] %s111_s30 }
  0x16   :  { %117 = dma.hbm_to_vmem [thread:$0]  %s110_s29, 512, %s112_s30, [#allocation16], %s923_s25, %s923_s25, %s924_s26  }
  0x17   :  { %908 = dma.done.wait [#allocation7], 256  }
  0x18   :  { %909 = vsyncadd [#allocation7], 4294967040 }
  0x19   :  { %910 = dma.done.wait [#allocation10], 512  }
  0x1a   :  { %911 = vsyncadd [#allocation10], 4294966784 }
  0x1b   :  { %912 = dma.done.wait [#allocation13], 1024  }
  0x1c   :  { %913 = vsyncadd [#allocation13], 4294966272 }
  0x1d   :  { %914 = dma.done.wait [#allocation16], 1024  }
  0x1e   :  { %915 = vsyncadd [#allocation16], 4294966272  ;;  %v1040_v0 = vld [vmem:[#allocation17] sm:$0xff]  ;;  %v1042_v1 = vld [vmem:[#allocation17 + $0x8] sm:$0xff]  ;;  %vm158_vm0 = vcmask 261120  }
  0x1f   :  { %v1044_v2 = vld [vmem:[#allocation17 + $0x10] sm:$0xff]  ;;  %v1046_v3 = vld [vmem:[#allocation17 + $0x18] sm:$0xff]  ;;  %v234_v8 = vld [vmem:[#allocation15 + $0x8] sm:$0xff] }
  0x20   :  { %v1051_v4 = vld [vmem:[%s1142_s10] sm:$0x1]  ;;  %v235_v6 = vld [vmem:[#allocation15 + $0x10] sm:$0xff]  ;;  %v193_v12 = vld [vmem:[#allocation14 + $0x8] sm:$0xff] }
  0x21   :  { %v236_v5 = vld [vmem:[#allocation15 + $0x18] sm:$0xff]  ;;  %v194_v10 = vld [vmem:[#allocation14 + $0x10] sm:$0xff]  ;;  %v233_v13 = vld [vmem:[#allocation15] sm:$0xff] }
  0x22   :  { %259 = vmatpush.msra.mxu2 %v236_v5  ;;  %v195_v7 = vld [vmem:[#allocation14 + $0x18] sm:$0xff]  ;;  %v152_v11 = vld [vmem:[#allocation12 + $0x10] sm:$0xff]  ;;  %v151_v14 = vld [vmem:[#allocation12 + $0x8] sm:$0xff] }
  0x23   :  { %218 = vmatpush.msra.mxu1 %v195_v7  ;;  %v153_v9 = vld [vmem:[#allocation12 + $0x18] sm:$0xff]  ;;  %v231_v15 = vld [vmem:[#allocation11] sm:$0xff]  ;;  %v192_v16 = vld [vmem:[#allocation14] sm:$0xff] }
  0x24   :  { %260 = vmatpush.msra.mxu2 %v235_v6  ;;  %665 = vmatpush.msra.mxu3 %v153_v9  ;;  %v190_v17 = vld [vmem:[#allocation9] sm:$0xff]  ;;  %v149_v19 = vld [vmem:[#allocation6 + $0x8] sm:$0xff]  ;;  %v148_v20 = vld [vmem:[#allocation6] sm:$0xff] }
  0x25   :  { %219 = vmatpush.msra.mxu1 %v194_v10  ;;  %177 = vmatpush.msra.mxu0 %v153_v9  ;;  %v150_v18 = vld [vmem:[#allocation12] sm:$0xff]  ;;  %v232_v21 = vld [vmem:[#allocation11 + $0x8] sm:$0xff]  ;;  %v191_v22 = vld [vmem:[#allocation9 + $0x8] sm:$0xff] }
  0x26   :  { %261 = vmatpush.msra.mxu2 %v234_v8  ;;  %666 = vmatpush.msra.mxu3 %v152_v11  ;;  %v693_v23 = vld [vmem:[%s1138_s6] ss:$0 sm:$0xff] }
  0x27   :  { %220 = vmatpush.msra.mxu1 %v193_v12  ;;  %178 = vmatpush.msra.mxu0 %v152_v11  ;;  %v695_v26 = vld [vmem:[%s1136_s4] ss:$0 sm:$0xff]  ;;  %s1074_s4 = smov 0  }
  0x28   :  { %262 = vmatpush.msra.mxu2 %v233_v13  ;;  %667 = vmatpush.msra.mxu3 %v151_v14  ;;  %v694_v27 = vld [vmem:[%s1140_s8] ss:$0 sm:$0xff] }
  0x29   :  { %649 = vmatmul.msk.f32.vlgmr.msra.gmra.mxu2 %vm158_vm0, %v231_v15  ;;  %221 = vmatpush.msra.mxu1 %v192_v16 }
  0x2a   :  { %647 = vmatmul.msk.f32.vlgmr.msra.gmra.mxu1 %vm158_vm0, %v190_v17  ;;  %668 = vmatpush.msra.mxu3 %v150_v18 }
  0x2b   :  { %646 = vmatmul.msk.f32.vlgmr.msra.gmra.mxu3 %vm158_vm0, %v149_v19  ;;  %179 = vmatpush.msra.mxu0 %v151_v14 }
  0x2d   :  { %180 = vmatpush.msra.mxu0 %v150_v18 }
  0x2e   :  { %645 = vmatmul.msk.f32.vlgmr.msra.gmra.mxu0 %vm158_vm0, %v148_v20 }
  0x31   :  { %650 = vmatmul.msk.f32.gmra.mxu2 %vm158_vm0, %v232_v21 }
  0x32   :  { %648 = vmatmul.msk.f32.gmra.mxu1 %vm158_vm0, %v191_v22 }
  0xa7   :  { %v223_v24 = vpop.f32.mrf.mxu1 }
  0xa8   :  { %v224_v25 = vadd.f32 %v693_v23, %v223_v24 }
  0xaa   :  { %229 = vst.msk [vmem:[#allocation3] sm:$0xff] %vm158_vm0, %v224_v25 }
  0xab   :  { %v182_v28 = vpop.f32.mrf.mxu0 }
  0xac   :  { %v264_v29 = vpop.f32.mrf.mxu2  ;;  %v183_v30 = vadd.f32 %v695_v26, %v182_v28 }
  0xad   :  { %v265_v31 = vadd.f32 %v694_v27, %v264_v29 }
  0xae   :  { %188 = vst.msk [vmem:[#allocation2] sm:$0xff] %vm158_vm0, %v183_v30  ;;  %v185_v32 = vpop.f32.mrf.mxu3 }
  0xaf   :  { %270 = vst.msk [vmem:[#allocation4] sm:$0xff] %vm158_vm0, %v265_v31  ;;  %v186_v33 = vadd.f32 %v695_v26, %v185_v32  ;;  %v226_v34 = vpop.f32.mrf.mxu1 }
  0xb0   :  { %v227_v35 = vadd.f32 %v693_v23, %v226_v34 }
  0xb1   :  { %189 = vst.msk [vmem:[#allocation2 + $0x8] sm:$0xff] %vm158_vm0, %v186_v33 }
  0xb2   :  { %230 = vst.msk [vmem:[#allocation3 + $0x8] sm:$0xff] %vm158_vm0, %v227_v35 }
  0xb4   :  { %v267_v36 = vpop.f32.mrf.mxu2 }
  0xb5   :  { %v268_v37 = vadd.f32 %v694_v27, %v267_v36 }
  0xb7   :  { %271 = vst.msk [vmem:[#allocation4 + $0x8] sm:$0xff] %vm158_vm0, %v268_v37 }
  0xb8 LB: > { %s1080_s6 = sshll.u32 %s920_s4, 3  ;;  %vm290_vm1 = vcmask 64512   ;;  %s931_s7 = smov 120   ;;  %vm427_vm2 = vcmask 130112   ;;  %vm503_vm3 = vcmask 195712   ;;  %vm579_vm4 = vcmask 261312   ;;  %s920_s4 = sphi %s1074_s4, %s282_s4  }
  0xb9   : > { %s284_s8 = scalar_lea.vmem [#allocation3], %s1080_s6  ;;  %s286_s16 = scalar_lea.vmem [#allocation2], %s1080_s6 }
  0xba   : > { %v285_v38 = vld [vmem:[%s284_s8] sm:$0xff]  ;;  %s932_s17 = smov 112   ;;  %s933_s18 = smov 104  }
  0xbb   : > { %652 = vmatpush.xpose.msk.msra.mxu0 %vm290_vm1, %v285_v38  ;;  %v287_v39 = vld [vmem:[%s286_s16] sm:$0xff]  ;;  %358 = vrot.lane.b32.xlu1 %v285_v38, %s931_s7  ;;  %s288_s19 = scalar_lea.vmem [#allocation4], %s1080_s6  ;;  %s934_s0 = smov 8  }
  0xbc   : > { %434 = vrot.lane.b32.xlu2 %v285_v38, %s932_s17  ;;  %s935_s20 = smov 24   ;;  %s936_s21 = smov 16  }
  0xbd   : > { %s608_s22 = scalar_lea.vmem [#allocation18], %s1080_s6  ;;  %s282_s4 = sadd.s32 1, %s920_s4  }
  0xbe   : > { %653 = vmatmul.msk.f32.vlgmr.msra.gmra.mxu0 %vm290_vm1, %v287_v39  ;;  %v289_v56 = vld [vmem:[%s288_s19] sm:$0xff]  ;;  %p279_p0 = scmp.ge.s32.totalorder %s282_s4, 2  }
  0xbf   : > { %347 = vmatpush.msra.mxu1 %v289_v56  ;;  %s616_s2 = sshll.u32 (%p279_p0), %s1143_s11, 4  ;;  %s937_s27 = smov (%p279_p0), [#allocation18]   ;;  %s617_s2 = int_to_ptr.hbm [resolvable:$true] %s616_s2 }
  0xc0   :  { %s614_s28 = sshll.u32 (%p279_p0), %s937_s27, 4  ;;  %s615_s28 = int_to_ptr.vmem [resolvable:$true] %s614_s28 }
  0xc3   : > { %356 = vrot.lane.b32.xlu1 %v287_v39, %s931_s7 }
  0xc4   : > { %510 = vrot.lane.b32.xlu2 %v285_v38, %s933_s18 }
  0xcb   : > { %508 = vrot.lane.b32.xlu1 %v287_v39, %s933_s18 }
 0x116   : > { %v435_v40 = vpop.permute.xlu2 %434 }
 0x117   : > { %658 = vmatpush.xpose.msk.msrb.mxu1 %vm290_vm1, %v435_v40 }
 0x11e   : > { %v511_v41 = vpop.permute.xlu2 %510 }
 0x11f   : > { %661 = vmatpush.xpose.msk.msrb.mxu0 %vm290_vm1, %v511_v41 }
 0x12d   : > { %v359_v42 = vpop.permute.xlu1 %358 }
 0x12e   : > { %655 = vmatpush.xpose.msk.msra.mxu2 %vm290_vm1, %v359_v42 }
 0x135   : > { %v357_v43 = vpop.permute.xlu1 %356 }
 0x136   : > { %656 = vmatmul.msk.f32.vlgmr.msra.gmra.mxu2 %vm290_vm1, %v357_v43  ;;  %v583_v43 = vperm.slane %v1051_v4, 0 }
 0x13b   : > { %v314_v44 = vpop.f32.mrf.mxu0 }
 0x13c   : > { %v317_v45 = vmul.f32 0.35355338, %v314_v44 }
 0x13d   : > { %v509_v46 = vpop.permute.xlu1 %508 }
 0x13e   : > { %v318_v47 = vsel %vm290_vm1, %v317_v45, -inf  ;;  %662 = vmatmul.msk.f32.vlgmr.msrb.gmra.mxu0 %vm290_vm1, %v509_v46 }
 0x13f   : > { %319 = vmax.xlane.f32.xlu0 %v318_v47 }
 0x1b2   : > { %v320_v48 = vpop.xlane.xlu0 %319 }
 0x1b3   : > { %v321_v49 = vsub.f32 %v317_v45, %v320_v48 }
 0x1b5   : > { %v322_v50 = vmul.f32 1.442695, %v321_v49 }
 0x1b7   : > { %696 = vpow2.f32 %v322_v50 }
 0x1b9   : > { %v381_v51 = vpop.f32.mrf.mxu2 }
 0x1ba   : > { %v384_v52 = vmul.f32 0.35355338, %v381_v51 }
 0x1bb   : > { %v533_v57 = vpop.f32.mrf.mxu0 }
 0x1bc   : > { %v385_v53 = vsel %vm290_vm1, %v384_v52, -inf  ;;  %v536_v58 = vmul.f32 0.35355338, %v533_v57 }
 0x1bd   : > { %v697_v54 = vpop.eup %696  ;;  %386 = vmax.xlane.f32.xlu2 %v385_v53 }
 0x1be   : > { %v324_v55 = vsel %vm290_vm1, %v697_v54, 0.0  ;;  %v537_v59 = vsel %vm290_vm1, %v536_v58, -inf }
 0x1bf   : > { %325 = vadd.xlane.f32.xlu0 %v324_v55 }
 0x1d3   : > { %432 = vrot.lane.b32.xlu0 %v287_v39, %s932_s17 }
 0x1fd   : > { %538 = vmax.xlane.f32.xlu0 %v537_v59 }
 0x211   : > { %473 = vrot.lane.b32.xlu0 %v289_v56, %s932_s17 }
 0x230   : > { %v387_v60 = vpop.xlane.xlu2 %386 }
 0x231   : > { %v388_v61 = vsub.f32 %v384_v52, %v387_v60 }
 0x232   : > { %v326_v62 = vpop.xlane.xlu0 %325 }
 0x233   : > { %698 = vrcp.f32 %v326_v62  ;;  %v389_v63 = vmul.f32 1.442695, %v388_v61 }
 0x235   : > { %700 = vpow2.f32 %v389_v63 }
 0x239   : > { %v699_v5 = vpop.eup %698 }
 0x23a   : > { %v328_v6 = vmul.f32 %v699_v5, %v697_v54 }
 0x23b   : > { %v701_v7 = vpop.eup %700 }
 0x23c   : > { %654 = vmatmul.msk.f32.vlgmr.msra.gmra.mxu1 %vm290_vm1, %v328_v6  ;;  %v391_v8 = vsel %vm290_vm1, %v701_v7, 0.0 }
 0x23d   : > { %392 = vadd.xlane.f32.xlu2 %v391_v8  ;;  %600 = vmatpush.msra.mxu1 %v1046_v3 }
 0x23f   : > { %601 = vmatpush.msra.mxu1 %v1044_v2 }
 0x241   : > { %602 = vmatpush.msra.mxu1 %v1042_v1 }
 0x243   : > { %603 = vmatpush.msra.mxu1 %v1040_v0 }
 0x245   : > { %v433_v9 = vpop.permute.xlu0 %432 }
 0x246   : > { %659 = vmatmul.msk.f32.vlgmr.msrb.gmra.mxu1 %vm290_vm1, %v433_v9 }
 0x270   : > { %v539_v10 = vpop.xlane.xlu0 %538 }
 0x271   : > { %v540_v11 = vsub.f32 %v536_v58, %v539_v10 }
 0x273   : > { %v541_v12 = vmul.f32 1.442695, %v540_v11 }
 0x275   : > { %702 = vpow2.f32 %v541_v12 }
 0x27b   : > { %v703_v13 = vpop.eup %702 }
 0x27c   : > { %v543_v14 = vsel %vm290_vm1, %v703_v13, 0.0 }
 0x27d   : > { %544 = vadd.xlane.f32.xlu2 %v543_v14 }
 0x283   : > { %v474_v28 = vpop.permute.xlu0 %473 }
 0x2b0   : > { %v393_v23 = vpop.xlane.xlu2 %392 }
 0x2b9   : > { %v349_v15 = vpop.f32.mrf.mxu1 }
 0x2ba   : > { %352 = vst.msk [vmem:[#allocation5] sm:$0xff] %vm290_vm1, %v349_v15 }
 0x2c3   : > { %v457_v16 = vpop.f32.mrf.mxu1 }
 0x2c4   : > { %v460_v17 = vmul.f32 0.35355338, %v457_v16 }
 0x2c6   : > { %v461_v18 = vsel %vm290_vm1, %v460_v17, -inf }
 0x2c7   : > { %462 = vmax.xlane.f32.xlu1 %v461_v18 }
 0x2e0   : > { %397 = vrot.lane.b32.xlu1 %v289_v56, %s931_s7 }
 0x2f0   : > { %v545_v29 = vpop.xlane.xlu2 %544 }
 0x33a   : > { %v463_v19 = vpop.xlane.xlu1 %462 }
 0x33b   : > { %v464_v20 = vsub.f32 %v460_v17, %v463_v19 }
 0x33d   : > { %v465_v21 = vmul.f32 1.442695, %v464_v20 }
 0x33f   : > { %704 = vpow2.f32 %v465_v21 }
 0x340   : > { %706 = vrcp.f32 %v393_v23 }
 0x341   : > { %708 = vrcp.f32 %v545_v29 }
 0x345   : > { %v705_v22 = vpop.eup %704 }
 0x346   : > { %v467_v24 = vsel %vm290_vm1, %v705_v22, 0.0  ;;  %v707_v25 = vpop.eup %706 }
 0x347   : > { %468 = vadd.xlane.f32.xlu2 %v467_v24  ;;  %v395_v27 = vmul.f32 %v707_v25, %v701_v7  ;;  %v709_v31 = vpop.eup %708 }
 0x348   : > { %v547_v35 = vmul.f32 %v709_v31, %v703_v13 }
 0x352   : > { %v398_v26 = vpop.permute.xlu1 %397 }
 0x353   : > { %418 = vmatpush.msra.mxu3 %v398_v26 }
 0x354   : > { %657 = vmatmul.msk.f32.vlgmr.msra.gmra.mxu3 %vm290_vm1, %v395_v27 }
 0x355   : > { %494 = vmatpush.msrb.mxu3 %v474_v28 }
 0x35f   : > { %549 = vrot.lane.b32.xlu2 %v289_v56, %s933_s18 }
 0x3ba   : > { %v469_v30 = vpop.xlane.xlu2 %468 }
 0x3bb   : > { %710 = vrcp.f32 %v469_v30 }
 0x3c1   : > { %v711_v32 = vpop.eup %710 }
 0x3c2   : > { %v550_v33 = vpop.permute.xlu2 %549  ;;  %v471_v34 = vmul.f32 %v711_v32, %v705_v22 }
 0x3c3   : > { %570 = vmatpush.msrb.mxu2 %v550_v33 }
 0x3c4   : > { %660 = vmatmul.msk.f32.vlgmr.msrb.gmra.mxu3 %vm290_vm1, %v471_v34  ;;  %663 = vmatmul.msk.f32.vlgmr.msrb.gmra.mxu2 %vm290_vm1, %v547_v35 }
 0x3d7   : > { %v420_v36 = vpop.f32.mrf.mxu3 }
 0x3d8   : > { %424 = vrot.lane.b32.xlu1 %v420_v36, %s934_s0 }
 0x447   : > { %v496_v37 = vpop.f32.mrf.mxu3  ;;  %v572_v38 = vpop.f32.mrf.mxu2 }
 0x448   : > { %576 = vrot.lane.b32.xlu1 %v572_v38, %s935_s20  ;;  %500 = vrot.lane.b32.xlu0 %v496_v37, %s936_s21 }
 0x44a   : > { %v425_v39 = vpop.permute.xlu1 %424 }
 0x44b   : > { %428 = vst.msk [vmem:[#allocation5] sm:$0xff] %vm427_vm2, %v425_v39 }
 0x4ba   : > { %v577_v40 = vpop.permute.xlu1 %576  ;;  %v501_v41 = vpop.permute.xlu0 %500 }
 0x4bb   : > { %504 = vst.msk [vmem:[#allocation5] sm:$0xff] %vm503_vm3, %v501_v41 }
 0x4bc   : > { %580 = vst.msk [vmem:[#allocation5] sm:$0xff] %vm579_vm4, %v577_v40 }
 0x4c3   : > { %v581_v42 = vld [vmem:[#allocation5] sm:$0xff] }
 0x4c4   : > { %664 = vmatmul.msk.f32.vlgmr.msra.gmra.mxu1 %vm158_vm0, %v581_v42 }
 0x540   :  { %281 = sbr.rel (!%p279_p0) target bundleno = 184 (0xb8), region = 103 }
 0x541   : > { %v605_v44 = vpop.f32.mrf.mxu1 }
 0x542   : > { %v606_v45 = vadd.f32 %v605_v44, %v583_v43 }
 0x544   : > { %609 = vst.msk [vmem:[%s608_s22] sm:$0xff] %vm158_vm0, %v606_v45 }
 0x545   :  { %622 = dma.vmem_to_hbm [thread:$0]  %s615_s28, 256, %s617_s2, [#allocation8], %s923_s25, %s923_s25, %s924_s26  }
 0x546   :  { %916 = dma.done.wait [#allocation8], 256  }
 0x547   :  { %917 = vsyncadd [#allocation8], 4294967040 }
 0x548   :  { %627 = vsyncpa [#allocation7], 1 }
 0x549   :  { %628 = vsyncpa [#allocation10], 1 }
 0x54a   :  { %629 = vsyncpa [#allocation13], 1 }
 0x54b   :  { %630 = vsyncpa [#allocation16], 1 }
 0x54c   :  { %631 = vsyncpa [#allocation8], 1 }

</bundles_post_ra>
